<compile_context>
chip_gen: v7x
topology: tpu7x:2x2x1
jax: 0.10.0
libtpu: 0.0.40
codegen_flags: <defaults>
</compile_context>

<pallas_src>
import math

import numpy as np
import jax
import jax.numpy as jnp
from jax.experimental import pallas as pl
from jax.experimental.pallas import tpu as pltpu


# Corner order (bx, by, bz) — matches f000, f100, f010, f110, f001, f101,
# f011, f111 in the PyTorch module.
CORNERS = ((0, 0, 0), (1, 0, 0), (0, 1, 0), (1, 1, 0),
           (0, 0, 1), (1, 0, 1), (0, 1, 1), (1, 1, 1))


# -----------------------------------------------------------------------------
# Parameter construction (deterministic, synthetic — mirrors GridEncoder + MLP)
# -----------------------------------------------------------------------------
def make_grid_params(key, *, level_dim=2, num_levels=4, log2_hashmap_size=12,
                     desired_resolution=32, output_dim=8, hidden_dim=32,
                     base_resolution=16):
    # Grid.__init__ passes desired_resolution + 1 to the encoder.
    enc_desired = desired_resolution + 1
    per_level_scale = 2.0 ** (
        math.log2(enc_desired / base_resolution) / max(num_levels - 1, 1))

    max_params = 2 ** log2_hashmap_size
    offsets = [0]
    for i in range(num_levels):
        r = int(math.ceil(base_resolution * per_level_scale ** i))
        params_in_level = min(max_params, (r + 1) ** 3)      # align_corners=False
        params_in_level = int(math.ceil(params_in_level / 8) * 8)
        offsets.append(offsets[-1] + params_in_level)

    k_emb, k_w1, k_w2 = jax.random.split(key, 3)
    embeddings = jax.random.uniform(
        k_emb, (offsets[-1], level_dim), minval=-1e-4, maxval=1e-4,
        dtype=jnp.float32)

    d_in = num_levels * level_dim
    # MLP(dim_in, output_dim, hidden_dim, num_layers=2, bias=False)
    w1 = (jax.random.uniform(k_w1, (d_in, hidden_dim), minval=-1.0, maxval=1.0,
                             dtype=jnp.float32) / math.sqrt(d_in))
    w2 = (jax.random.uniform(k_w2, (hidden_dim, output_dim), minval=-1.0,
                             maxval=1.0, dtype=jnp.float32)
          / math.sqrt(hidden_dim))

    return dict(embeddings=embeddings, offsets=offsets, num_levels=num_levels,
                level_dim=level_dim, base_resolution=base_resolution,
                per_level_scale=per_level_scale, resolution=desired_resolution,
                w1=w1, w2=w2)


# -----------------------------------------------------------------------------
# Multiresolution hash-grid encoder (JAX glue; faithful re-implementation of
# the gridencoder CUDA extension semantics, align_corners=False, linear
# interpolation).  Produces features directly in LANE-DENSE (D_in, N) layout.
# -----------------------------------------------------------------------------
def hash_encode_lane_dense(x, params):
    """x: (N, 3) in [0, 1] -> (num_levels * level_dim, N) float32."""
    emb = params["embeddings"]
    offsets = params["offsets"]
    num_levels = params["num_levels"]
    level_dim = params["level_dim"]
    base_res = params["base_resolution"]
    pls = params["per_level_scale"]
    primes = (np.uint32(1), np.uint32(2654435761), np.uint32(805459861))

    n = x.shape[0]
    feats = []
    for level in range(num_levels):
        scale = base_res * (pls ** level) - 1.0
        resolution = int(math.ceil(scale)) + 1
        hashmap_size = offsets[level + 1] - offsets[level]
        dense = (resolution + 1) ** 3 <= hashmap_size

        pos = x * scale + 0.5
        pos_g = jnp.floor(pos)
        pfrac = pos - pos_g
        pos_g = pos_g.astype(jnp.uint32)

        acc = jnp.zeros((level_dim, n), jnp.float32)
        for corner in range(8):
            bits = [(corner >> d) & 1 for d in range(3)]
            cg = pos_g + jnp.array(bits, dtype=jnp.uint32)
            wgt = jnp.ones((n,), jnp.float32)
            for d in range(3):
                wgt = wgt * (pfrac[:, d] if bits[d] else 1.0 - pfrac[:, d])
            if dense:
                stride = resolution + 1
                idx = (cg[:, 0]
                       + cg[:, 1] * jnp.uint32(stride)
                       + cg[:, 2] * jnp.uint32(stride * stride))
            else:
                idx = ((cg[:, 0] * primes[0])
                       ^ (cg[:, 1] * primes[1])
                       ^ (cg[:, 2] * primes[2]))
            idx = (idx % jnp.uint32(hashmap_size)).astype(jnp.int32) + offsets[level]
            # TODO(synk): data-dependent hash-table gather has no clean Pallas
            # equivalent on TPU; it stays in JAX glue.
            acc = acc + wgt[None, :] * emb[idx].T          # (level_dim, N)
        feats.append(acc)
    return jnp.concatenate(feats, axis=0)                  # (D_in, N)


# -----------------------------------------------------------------------------
# Pallas kernel: fused per-corner 2-layer MLP + trilinear blend, lane-dense.
# -----------------------------------------------------------------------------
def grid_mlp_interp(frac8, enc_rows, w1bd, w2bd, *, tile_n, hidden, d_out):
    """frac8:    (8, Npad)        f32  rows 0..2 = (u, v, w) fractional coords
       enc_rows: (8*D_in, Npad)   bf16 row c*D_in + f = feature f of corner c
       w1bd:     (8*H, 8*D_in)    bf16 block-diagonal stack of W1^T per corner
       w2bd:     (8*d_out, 8*H)   bf16 block-diagonal stack of W2^T per corner
       returns:  (d_out, Npad)    f32  lane-dense output slab
    """
    d8, npad = enc_rows.shape
    assert npad % tile_n == 0
    n_steps = npad // tile_n

    def kernel(frac_ref, enc_ref, w1bd_ref, w2bd_ref, out_ref):
        x = enc_ref[...]                                            # (8*D_in, TN) bf16
        # Layer 1 for all 8 corners in ONE MXU matmul (K=64 < one MXU pass,
        # M=256 exactly fills a v6e/v7x weight tile), bf16 in / f32 acc.
        h = jnp.dot(w1bd_ref[...], x, preferred_element_type=jnp.float32)
        # ReLU in f32 (v5e has no bf16 VPU), store/feed onward as bf16.
        h = jnp.maximum(h, 0.0).astype(jnp.bfloat16)                # (8*H, TN) bf16
        # Layer 2 for all 8 corners in ONE MXU matmul -> per-corner outputs.
        g = jnp.dot(w2bd_ref[...], h, preferred_element_type=jnp.float32)
        # g: (8*d_out, TN) f32; rows [c*d_out, (c+1)*d_out) = corner c output.

        # Trilinear corner weights with shared sub-products (pure VPU).
        u = frac_ref[0:1, :]                                        # (1, TN) f32
        v = frac_ref[1:2, :]
        w = frac_ref[2:3, :]
        um = 1.0 - u
        vm = 1.0 - v
        wm = 1.0 - w
        xy00 = um * vm
        xy10 = u * vm
        xy01 = um * v
        xy11 = u * v
        # Order matches CORNERS: (0,0,0),(1,0,0),(0,1,0),(1,1,0),
        #                        (0,0,1),(1,0,1),(0,1,1),(1,1,1)
        wc = (xy00 * wm, xy10 * wm, xy01 * wm, xy11 * wm,
              xy00 * w,  xy10 * w,  xy01 * w,  xy11 * w)

        acc = wc[0] * g[0:d_out, :]                                 # (d_out, TN) f32
        for c in range(1, 8):                                       # static unroll
            acc = acc + wc[c] * g[c * d_out:(c + 1) * d_out, :]     # 8-sublane slice
        out_ref[...] = acc

    return pl.pallas_call(
        kernel,
        out_shape=jax.ShapeDtypeStruct((d_out, npad), jnp.float32),
        grid_spec=pltpu.PrefetchScalarGridSpec(
            num_scalar_prefetch=0,
            grid=(n_steps,),
            in_specs=[
                pl.BlockSpec((8, tile_n), lambda i: (0, i)),
                pl.BlockSpec((d8, tile_n), lambda i: (0, i)),
                pl.BlockSpec(tuple(w1bd.shape), lambda i: (0, 0)),
                pl.BlockSpec(tuple(w2bd.shape), lambda i: (0, 0)),
            ],
            out_specs=pl.BlockSpec((d_out, tile_n), lambda i: (0, i)),
        ),
        compiler_params=pltpu.CompilerParams(
            dimension_semantics=("parallel",),
            vmem_limit_bytes=32 * 1024 * 1024,
        ),
    )(frac8, enc_rows, w1bd, w2bd)


def _pick_tile_n(n):
    """Largest lane-dense tile that still leaves >= 4 grid steps
    (>= 2 per v7x TensorCore) to keep the pipeline busy on a microsecond
    kernel; larger tiles amortize the ~0.35 us/step overhead for big N."""
    for t in (2048, 1024, 512, 256, 128):
        if pl.cdiv(n, t) >= 4:
            return t
    return 128


# -----------------------------------------------------------------------------
# Grid.forward
# -----------------------------------------------------------------------------
def grid_forward(xyz, bound, params, *, tile_n=None):
    n = xyz.shape[0]
    res = float(params["resolution"])
    d_in = params["num_levels"] * params["level_dim"]
    hidden = params["w1"].shape[1]
    d_out = params["w2"].shape[1]
    # Sublane-aligned static slices in the kernel require these:
    assert hidden % 8 == 0, "hidden_dim must be a multiple of 8"
    assert d_out % 8 == 0, "output_dim must be a multiple of 8"

    if tile_n is None:
        tile_n = _pick_tile_n(n)

    x01 = (xyz + bound) / (2.0 * bound)
    coords = x01 * res
    c0 = jnp.clip(jnp.floor(coords), 0.0, res - 1.0)   # clamped floor (cx0,cy0,cz0)
    frac = coords - c0                                  # (N, 3) = (u, v, w)

    # Encode the 8 integer corners directly in lane-dense (D_in, N) layout
    # (hash-table gather stays in XLA glue), concatenate corner-major.
    enc_ld = jnp.concatenate(
        [hash_encode_lane_dense(
            (c0 + jnp.array([bx, by, bz], dtype=jnp.float32)) / res, params)
         for (bx, by, bz) in CORNERS],
        axis=0)                                                     # (8*D_in, N) f32
    assert enc_ld.shape[0] == 8 * d_in

    # bf16 before padding (half-size pad copy), points on the 128-lane axis.
    npad = pl.cdiv(n, tile_n) * tile_n
    enc_rows = jnp.pad(enc_ld.astype(jnp.bfloat16), ((0, 0), (0, npad - n)))
    frac8 = jnp.zeros((8, npad), jnp.float32).at[:3, :n].set(frac.T)

    # Block-diagonal stacks of W1^T and W2^T (one block per corner), bf16.
    eye8 = jnp.eye(8, dtype=jnp.float32)
    w1bd = jnp.kron(eye8, params["w1"].T).astype(jnp.bfloat16)      # (8*H, 8*D_in)
    w2bd = jnp.kron(eye8, params["w2"].T).astype(jnp.bfloat16)      # (8*d_out, 8*H)

    out_t = grid_mlp_interp(frac8, enc_rows, w1bd, w2bd,
                            tile_n=tile_n, hidden=hidden, d_out=d_out)
    # TODO(synk): consumers that accept the lane-dense (d_out, N) slab could
    # skip this transpose (an extra HBM pass).
    out = out_t[:, :n].T                                            # (N, d_out) f32
    return out, enc_ld, frac


# -----------------------------------------------------------------------------
# Pure-JAX reference (mirrors the kernel's bf16 quantization points & order:
# per-corner layer1 -> ReLU -> bf16 -> layer2 -> f32 trilinear blend)
# -----------------------------------------------------------------------------
def grid_ref(enc_ld, frac, w1, w2):
    d_in = w1.shape[0]
    enc = enc_ld.reshape(8, d_in, -1)                               # (8, D_in, N)
    enc_q = enc.astype(jnp.bfloat16).astype(jnp.float32)
    w1_q = w1.astype(jnp.bfloat16).astype(jnp.float32)
    w2_q = w2.astype(jnp.bfloat16).astype(jnp.float32)
    u, v, w = frac[:, 0:1], frac[:, 1:2], frac[:, 2:3]
    out = 0.0
    for c, (bx, by, bz) in enumerate(CORNERS):
        h = jnp.maximum(enc_q[c].T @ w1_q, 0.0)                     # (N, H)
        h = h.astype(jnp.bfloat16).astype(jnp.float32)
        oc = h @ w2_q                                               # (N, d_out)
        wc = ((u if bx else 1.0 - u) *
              (v if by else 1.0 - v) *
              (w if bz else 1.0 - w))
        out = out + wc * oc
    return out


if __name__ == "__main__":
    key = jax.random.PRNGKey(0)
    k_params, k_xyz = jax.random.split(key)

    # Small-but-representative Grid configuration.
    params = make_grid_params(k_params, level_dim=2, num_levels=4,
                              log2_hashmap_size=12, desired_resolution=32,
                              output_dim=8, hidden_dim=32)

    N = 1000                     # deliberately not a multiple of tile_n
    bound = 1.0
    xyz = jax.random.uniform(k_xyz, (N, 3), minval=-bound, maxval=bound,
                             dtype=jnp.float32)

    # tile_n auto-picked: N=1000 -> npad=1024, tile_n=256 -> 4 grid steps
    # (>= 2 per v7x TensorCore).
    out, enc_ld, frac = grid_forward(xyz, bound, params)
    out = jax.block_until_ready(out)

    ref = grid_ref(enc_ld, frac, params["w1"], params["w2"])
    assert out.shape == (N, 8) and out.dtype == jnp.float32
    assert bool(jnp.allclose(out, ref, rtol=1e-3, atol=1e-6)), "mismatch vs reference"

    print("KERNEL_OK")
</pallas_src>

<mosaic_0001>
module attributes {stable_mosaic.version = 11 : i64} {
  func.func @kernel(%arg0: i32, %arg1: memref<8x256xf32, #tpu.memory_space<vmem>>, %arg2: memref<64x256xbf16, #tpu.memory_space<vmem>>, %arg3: memref<256x64xbf16, #tpu.memory_space<vmem>>, %arg4: memref<64x256xbf16, #tpu.memory_space<vmem>>, %arg5: memref<8x256xf32, #tpu.memory_space<vmem>>) attributes {dimension_semantics = [#tpu.dimension_semantics<parallel>], iteration_bounds = array<i64: 4>, scalar_prefetch = 0 : i64, scratch_operands = 0 : i64, tpu.core_type = #tpu.core_type<tc>, window_params = [{transform_indices = @transform_0, window_bounds = array<i64: 8, 256>}, {transform_indices = @transform_1, window_bounds = array<i64: 64, 256>}, {pipeline_mode = #tpu.pipeline_mode<synchronous>, transform_indices = @transform_2, window_bounds = array<i64: 256, 64>}, {pipeline_mode = #tpu.pipeline_mode<synchronous>, transform_indices = @transform_3, window_bounds = array<i64: 64, 256>}, {transform_indices = @transform_4, window_bounds = array<i64: 8, 256>}]} {
    %c0 = arith.constant 0 : index
    %c0_0 = arith.constant 0 : index
    %0 = vector.load %arg2[%c0, %c0_0] : memref<64x256xbf16, #tpu.memory_space<vmem>>, vector<64x256xbf16>
    %c0_1 = arith.constant 0 : index
    %c0_2 = arith.constant 0 : index
    %1 = vector.load %arg3[%c0_1, %c0_2] : memref<256x64xbf16, #tpu.memory_space<vmem>>, vector<256x64xbf16>
    %cst = arith.constant dense<0.000000e+00> : vector<256x256xf32>
    %2 = tpu.matmul %1, %0, %cst {dimension_numbers = #tpu.dot_dimension_numbers<[1], [0], [0], [1], [0, 0, 1, 1], [], []>} : vector<256x64xbf16>, vector<64x256xbf16>, vector<256x256xf32> -> vector<256x256xf32>
    %cst_3 = arith.constant 0.000000e+00 : f32
    %3 = vector.broadcast %cst_3 : f32 to vector<256x256xf32>
    %4 = arith.maximumf %2, %3 : vector<256x256xf32>
    %5 = arith.truncf %4 : vector<256x256xf32> to vector<256x256xbf16>
    %c0_4 = arith.constant 0 : index
    %c0_5 = arith.constant 0 : index
    %6 = vector.load %arg4[%c0_4, %c0_5] : memref<64x256xbf16, #tpu.memory_space<vmem>>, vector<64x256xbf16>
    %cst_6 = arith.constant dense<0.000000e+00> : vector<64x256xf32>
    %7 = tpu.matmul %6, %5, %cst_6 {dimension_numbers = #tpu.dot_dimension_numbers<[1], [0], [0], [1], [0, 0, 1, 1], [], []>} : vector<64x256xbf16>, vector<256x256xbf16>, vector<64x256xf32> -> vector<64x256xf32>
    %c0_7 = arith.constant 0 : index
    %c0_8 = arith.constant 0 : index
    %8 = vector.load %arg1[%c0_7, %c0_8] : memref<8x256xf32, #tpu.memory_space<vmem>>, vector<1x256xf32>
    %c1 = arith.constant 1 : index
    %c0_9 = arith.constant 0 : index
    %9 = vector.load %arg1[%c1, %c0_9] : memref<8x256xf32, #tpu.memory_space<vmem>>, vector<1x256xf32>
    %c2 = arith.constant 2 : index
    %c0_10 = arith.constant 0 : index
    %10 = vector.load %arg1[%c2, %c0_10] : memref<8x256xf32, #tpu.memory_space<vmem>>, vector<1x256xf32>
    %cst_11 = arith.constant 1.000000e+00 : f32
    %11 = vector.broadcast %cst_11 : f32 to vector<1x256xf32>
    %12 = arith.subf %11, %8 : vector<1x256xf32>
    %cst_12 = arith.constant 1.000000e+00 : f32
    %13 = vector.broadcast %cst_12 : f32 to vector<1x256xf32>
    %14 = arith.subf %13, %9 : vector<1x256xf32>
    %cst_13 = arith.constant 1.000000e+00 : f32
    %15 = vector.broadcast %cst_13 : f32 to vector<1x256xf32>
    %16 = arith.subf %15, %10 : vector<1x256xf32>
    %17 = arith.mulf %12, %14 : vector<1x256xf32>
    %18 = arith.mulf %8, %14 : vector<1x256xf32>
    %19 = arith.mulf %12, %9 : vector<1x256xf32>
    %20 = arith.mulf %8, %9 : vector<1x256xf32>
    %21 = arith.mulf %17, %16 : vector<1x256xf32>
    %22 = arith.mulf %18, %16 : vector<1x256xf32>
    %23 = arith.mulf %19, %16 : vector<1x256xf32>
    %24 = arith.mulf %20, %16 : vector<1x256xf32>
    %25 = arith.mulf %17, %10 : vector<1x256xf32>
    %26 = arith.mulf %18, %10 : vector<1x256xf32>
    %27 = arith.mulf %19, %10 : vector<1x256xf32>
    %28 = arith.mulf %20, %10 : vector<1x256xf32>
    %29 = vector.extract_strided_slice %7 {offsets = [0, 0], sizes = [8, 256], strides = [1, 1]} : vector<64x256xf32> to vector<8x256xf32>
    %30 = vector.broadcast %21 : vector<1x256xf32> to vector<8x256xf32>
    %31 = arith.mulf %30, %29 : vector<8x256xf32>
    %32 = vector.extract_strided_slice %7 {offsets = [8, 0], sizes = [8, 256], strides = [1, 1]} : vector<64x256xf32> to vector<8x256xf32>
    %33 = vector.broadcast %22 : vector<1x256xf32> to vector<8x256xf32>
    %34 = arith.mulf %33, %32 : vector<8x256xf32>
    %35 = arith.addf %31, %34 : vector<8x256xf32>
    %36 = vector.extract_strided_slice %7 {offsets = [16, 0], sizes = [8, 256], strides = [1, 1]} : vector<64x256xf32> to vector<8x256xf32>
    %37 = vector.broadcast %23 : vector<1x256xf32> to vector<8x256xf32>
    %38 = arith.mulf %37, %36 : vector<8x256xf32>
    %39 = arith.addf %35, %38 : vector<8x256xf32>
    %40 = vector.extract_strided_slice %7 {offsets = [24, 0], sizes = [8, 256], strides = [1, 1]} : vector<64x256xf32> to vector<8x256xf32>
    %41 = vector.broadcast %24 : vector<1x256xf32> to vector<8x256xf32>
    %42 = arith.mulf %41, %40 : vector<8x256xf32>
    %43 = arith.addf %39, %42 : vector<8x256xf32>
    %44 = vector.extract_strided_slice %7 {offsets = [32, 0], sizes = [8, 256], strides = [1, 1]} : vector<64x256xf32> to vector<8x256xf32>
    %45 = vector.broadcast %25 : vector<1x256xf32> to vector<8x256xf32>
    %46 = arith.mulf %45, %44 : vector<8x256xf32>
    %47 = arith.addf %43, %46 : vector<8x256xf32>
    %48 = vector.extract_strided_slice %7 {offsets = [40, 0], sizes = [8, 256], strides = [1, 1]} : vector<64x256xf32> to vector<8x256xf32>
    %49 = vector.broadcast %26 : vector<1x256xf32> to vector<8x256xf32>
    %50 = arith.mulf %49, %48 : vector<8x256xf32>
    %51 = arith.addf %47, %50 : vector<8x256xf32>
    %52 = vector.extract_strided_slice %7 {offsets = [48, 0], sizes = [8, 256], strides = [1, 1]} : vector<64x256xf32> to vector<8x256xf32>
    %53 = vector.broadcast %27 : vector<1x256xf32> to vector<8x256xf32>
    %54 = arith.mulf %53, %52 : vector<8x256xf32>
    %55 = arith.addf %51, %54 : vector<8x256xf32>
    %56 = vector.extract_strided_slice %7 {offsets = [56, 0], sizes = [8, 256], strides = [1, 1]} : vector<64x256xf32> to vector<8x256xf32>
    %57 = vector.broadcast %28 : vector<1x256xf32> to vector<8x256xf32>
    %58 = arith.mulf %57, %56 : vector<8x256xf32>
    %59 = arith.addf %55, %58 : vector<8x256xf32>
    %c0_14 = arith.constant 0 : index
    %c0_15 = arith.constant 0 : index
    %60 = vector.load %arg5[%c0_14, %c0_15] : memref<8x256xf32, #tpu.memory_space<vmem>>, vector<8x256xf32>
    tpu.vector_store %arg5[%c0_14, %c0_15], %59 {strides = array<i32>} : memref<8x256xf32, #tpu.memory_space<vmem>>, vector<8x256xf32>,
    return
  }
  func.func @transform_0(%arg0: i32) -> (i32, i32) {
    %c0_i32 = arith.constant 0 : i32
    %c0_i32_0 = arith.constant 0 : i32
    return %c0_i32, %arg0 : i32, i32
  }
  func.func @transform_1(%arg0: i32) -> (i32, i32) {
    %c0_i32 = arith.constant 0 : i32
    %c0_i32_0 = arith.constant 0 : i32
    return %c0_i32, %arg0 : i32, i32
  }
  func.func @transform_2(%arg0: i32) -> (i32, i32) {
    %c0_i32 = arith.constant 0 : i32
    %c0_i32_0 = arith.constant 0 : i32
    %c0_i32_1 = arith.constant 0 : i32
    return %c0_i32, %c0_i32_0 : i32, i32
  }
  func.func @transform_3(%arg0: i32) -> (i32, i32) {
    %c0_i32 = arith.constant 0 : i32
    %c0_i32_0 = arith.constant 0 : i32
    %c0_i32_1 = arith.constant 0 : i32
    return %c0_i32, %c0_i32_0 : i32, i32
  }
  func.func @transform_4(%arg0: i32) -> (i32, i32) {
    %c0_i32 = arith.constant 0 : i32
    %c0_i32_0 = arith.constant 0 : i32
    return %c0_i32, %arg0 : i32, i32
  }
}

</mosaic_0001>

<bundles_post_ra>
// kernel: tpu_custom_call.1
= control target key start
LH: loop header
LB: loop body
LE: loop exit
PB: predicated region body
PF: predicated region fallthrough
CT: control target
= control target key end

     0   :  { %9 = vsyncpa [#allocation3], 0  ;;  %s1673_s0 = inlined_call_operand.vmem [shape: f32[8,1024], index: 0, kind: input, shape index: {}]   ;;  %s1674_s1 = inlined_call_operand.hbm [shape: bf16[64,1024], index: 1, kind: input, shape index: {}]   ;;  %s1675_s2 = inlined_call_operand.vmem [shape: bf16[256,64], index: 2, kind: input, shape index: {}]   ;;  %s1676_s3 = inlined_call_operand.vmem [shape: bf16[64,256], index: 3, kind: input, shape index: {}]   ;;  %s1677_s4 = inlined_call_operand.hbm [shape: f32[8,1024], index: 4, kind: output, shape index: {}]  }
   0x1   :  { %11 = vsyncpa [#allocation3 + $0x1], 0 }
   0x2   :  { %12 = vsyncpa [#allocation4], 0 }
   0x3   :  { %14 = vsyncpa [#allocation4 + $0x1], 0  ;;  %s1384_s15 = smov 0   ;;  %s1386_s16 = smov 0  }
   0x4   :  { %s1388_s17 = smov 0   ;;  %s1390_s18 = smov 0  }
   0x5 LB: > { %s1405_s19 = sadd.s32 4294967295, %s1351_s18   ;;  %s1097_s20 = sadd.s32 4294967294, %s1351_s18   ;;  %s1351_s18 = sphi %s1390_s18, %s1690_s18   ;;  %s1347_s17 = sphi %s1388_s17, %s1689_s17   ;;  %s1343_s16 = sphi %s1386_s16, %s1688_s16   ;;  %s1339_s15 = sphi %s1384_s15, %s1687_s15  }
   0x6   : > { %s1409_s21 = sadd.s32 1, %s1351_s18   ;;  %s53_s22 = sadd.s32 1, %s1347_s17 }
   0x7   : > { %s50_s23 = ssub.s32 %s1351_s18, %s1409_s21  ;;  %p60_p0 = scmp.ne.s32.totalorder %s1347_s17, %s1343_s16 }
   0x8   : > { %p51_p1 = scmp.eq.s32.totalorder %s50_s23, 0  ;;  %p61_p2 = scmp.eq.s32.totalorder %s1351_s18, 0 }
   0x9   : > { %p66_p3 = scmp.ne.s32.totalorder %s1343_s16, %s1339_s15  ;;  %p67_p4 = scmp.eq.s32.totalorder %s1405_s19, 0 }
   0xa   : > { %s1421_s24 = scalar_select %p51_p1, %s1347_s17, %s53_s22  }
   0xb   : > { %p1423_p5 = por %p61_p2, %p60_p0  ;;  %p1427_p6 = por %p67_p4, %p66_p3 }
   0xc   : > { %p132_p7 = scmp.eq.s32.totalorder %s1405_s19, 3  ;;  %p138_p8 = scmp.eq.s32.totalorder %s1097_s20, 3 }
   0xd   : > { %p1177_p9 = scmp.lt.s32.totalorder %s1351_s18, 4  ;;  %s173_s29 = sand.u32 1, %s1347_s17  }
   0xe   : > { %p1433_p10 = por %p132_p7, %p60_p0  ;;  %p1437_p11 = por %p138_p8, %p66_p3 }
   0xf   : > { %s1163_s30 = sshll.u32 %s1351_s18, 7  ;;  %s1100_s5 = sshll.u32 %s173_s29, 6 }
  0x10   : > { %s1681_s27 = scalar_select %p1433_p10, 1, 0 }
  0x11   : > { %s1682_s28 = scalar_select %p1437_p11, 1, 0 }
  0x12   : > { %s1446_s8 = scalar_lea.hbm %s1674_s1, %s1163_s30  ;;  %s177_s9 = scalar_lea.vmem [#allocation2], %s1100_s5 }
  0x13   : > { %s184_s10 = sshll.u32 %s177_s9, 4  ;;  %p1450_p12 = pnand %p1177_p9, %p1423_p5  ;;  %s1454_s10 = int_to_ptr.vmem [resolvable:$true] %s184_s10 }
  0x14   : > { %s1457_s12 = scalar_lea.sflag [#allocation3], %s173_s29  ;;  %s1255_s13 = scalar_lea.hbm %s1446_s8, 1024 }
  0x15   : > { %p1256_p0 = scmp.ne.s32.totalorder %s1446_s8, %s1255_s13  ;;  %p1257_p1 = pneg %p1450_p12 }
  0x16   : > { %s1260_s22 = scalar_lea.hbm %s1674_s1, 4096  ;;  %p1261_p4 = scmp.lt.u32.totalorder %s1446_s8, %s1674_s1 }
  0x17   : > { %p1258_p2 = pnand %p1257_p1, %p1256_p0  ;;  %p1262_p5 = scmp.lt.u32.totalorder %s1260_s22, %s1255_s13 }
  0x18   : > { %p1264_p8 = scmp.lt.u32.totalorder %s1255_s13, %s1446_s8 }
  0x19   : > { %p1259_p3 = pneg %p1258_p2  ;;  %p1263_p7 = por %p1262_p5, %p1261_p4 }
  0x1b   : > { %p1265_p9 = por %p1264_p8, %p1263_p7 }
  0x1d   : > { %p1266_p13 = pnand %p1265_p9, %p1259_p3 }
  0x1f   : > { %1269 = shalt.err (!%p1266_p13)
}
  0x20   : > { %s1270_s29 = scalar_lea.vmem %s1454_s10, 1024  ;;  %s1353_s30 = smov [#allocation2]  }
  0x21   : > { %p1271_p0 = scmp.ne.s32.totalorder %s1454_s10, %s1270_s29  ;;  %s1275_s5 = sshll.u32 %s1353_s30, 4  ;;  %s1276_s5 = int_to_ptr.vmem [resolvable:$false] %s1275_s5 }
  0x22   : > { %s1277_s6 = scalar_lea.vmem %s1276_s5, 2048  ;;  %p1278_p10 = scmp.lt.s32.totalorder %s1454_s10, %s1276_s5 }
  0x23   : > { %p1273_p2 = pnand %p1271_p0, %p1257_p1  ;;  %p1279_p4 = scmp.lt.s32.totalorder %s1277_s6, %s1270_s29 }
  0x25   : > { %p1274_p11 = pneg %p1273_p2  ;;  %p1280_p5 = por %p1279_p4, %p1278_p10 }
  0x27   : > { %p1281_p7 = pnand %p1280_p5, %p1274_p11 }
  0x29   : > { %1284 = shalt.err (!%p1281_p7)
}
  0x2a   : > { %s1354_s7 = smov 512   ;;  %s1355_s9 = smov 128  }
  0x2b   : > { %s1356_s13 = smov 8   ;;  %p192_p13 = scmp.lt.s32.totalorder %s1351_s18, 5 }
  0x2c   : > { %1172 = dma.hbm_to_vmem [thread:$0]  (!%p1450_p12), %s1446_s8, 1024, %s1454_s10, %s1457_s12, %s1354_s7, %s1355_s9, %s1356_s13  }
  0x2d   : > { %p1684_p1 = scmp.ge.s32.totalorder %s1351_s18, 1 }
  0x2f   : > { %p193_p3 = pnand %p1684_p1, %p192_p13 }
  0x30   : > { %s1489_s14 = sand.u32 (!%p193_p3), 1, %s1343_s16  }
  0x31   : > { %196 = sbr.rel (%p193_p3) target bundleno = 674 (0x2a2), region = 36  ;;  %s1104_s20 = sshll.u32 (!%p193_p3), %s1489_s14, 6 }
  0x32   : > { %s199_s22 = scalar_lea.sflag (!%p193_p3), [#allocation3], %s1489_s14  ;;  %s202_s23 = scalar_lea.vmem (!%p193_p3), [#allocation2], %s1104_s20 }
  0x38   : > { %1330 = dma.done.wait (%p1427_p6), %s199_s22, 1024  }
  0x39   : > { %1332 = vsyncadd (%p1427_p6), %s199_s22, 4294966272  ;;  %v1357_v0 = vmov 0   ;;  %v1215_v1 = vld [vmem:[%s202_s23 + $0x4] ss:$8 sps:$4 sm:$0xff]   ;;  %v1217_v2 = vld [vmem:[%s202_s23] ss:$8 sps:$4 sm:$0xff]  }
  0x3a   : > { %482 = vmatprep.mubr.bf16.mxu0 %v1357_v0  ;;  %450 = vmatprep.subr.bf16.mxu0 %v1215_v1  ;;  %v1218_v3 = vld [vmem:[%s202_s23 + $0x14] ss:$8 sps:$4 sm:$0xff]   ;;  %v1220_v4 = vld [vmem:[%s202_s23 + $0x10] ss:$8 sps:$4 sm:$0xff]   ;;  %v1221_v5 = vld [vmem:[%s202_s23 + $0x24] ss:$8 sps:$4 sm:$0xff]  }
  0x3b   : > { %451 = vmatpush1.bf16.msra.mxu0 %v1217_v2  ;;  %v1223_v6 = vld [vmem:[%s202_s23 + $0x20] ss:$8 sps:$4 sm:$0xff]   ;;  %v1224_v7 = vld [vmem:[%s202_s23 + $0x34] ss:$8 sps:$4 sm:$0xff]   ;;  %v1226_v8 = vld [vmem:[%s202_s23 + $0x30] ss:$8 sps:$4 sm:$0xff]  }
  0x3c   : > { %452 = vmatprep.subr.bf16.mxu0 %v1218_v3  ;;  %v1227_v9 = vld [vmem:[%s1675_s2] sm:$0xff]   ;;  %vm401_vm0 = vcmask 523264   ;;  %v1228_v10 = vld [vmem:[%s1675_s2 + $0x8] sm:$0xff]   ;;  %v1229_v11 = vld [vmem:[%s1675_s2 + $0x10] sm:$0xff]   ;;  %s1106_s26 = sshll.u32 %s1405_s19, 1  ;;  %s1105_s25 = sshll.u32 %s1489_s14, 4 }
  0x3d   : > { %v1230_v12 = vld [vmem:[%s1675_s2 + $0x18] sm:$0xff]   ;;  %v1231_v13 = vld [vmem:[%s1675_s2 + $0x20] sm:$0xff]   ;;  %v1232_v14 = vld [vmem:[%s1675_s2 + $0x28] sm:$0xff]   ;;  %p233_p6 = scmp.lt.s32.totalorder %s1106_s26, 7  ;;  %s1164_s29 = sshll.u32 %s1405_s19, 8 }
  0x3e   : > { %v1233_v15 = vld [vmem:[%s1675_s2 + $0x30] sm:$0xff]   ;;  %v1234_v16 = vld [vmem:[%s1675_s2 + $0x38] sm:$0xff]   ;;  %v1235_v17 = vld [vmem:[%s1675_s2 + $0x40] sm:$0xff]   ;;  %s231_s30 = scalar_lea.vmem [#allocation5], %s1105_s25  ;;  %s1630_s9 = scalar_lea.hbm %s1677_s4, %s1164_s29 }
  0x3f   : > { %453 = vmatpush1.bf16.msra.mxu0 %v1220_v4  ;;  %v1236_v18 = vld [vmem:[%s1675_s2 + $0x48] sm:$0xff]   ;;  %v1237_v19 = vld [vmem:[%s1675_s2 + $0x50] sm:$0xff]   ;;  %v1238_v20 = vld [vmem:[%s1675_s2 + $0x58] sm:$0xff]   ;;  %s1692_s26 = smov (!%p233_p6, %s1106_s26), 7  ;;  %s1015_s5 = sshll.u32 %s231_s30, 4  ;;  %s1632_s5 = int_to_ptr.vmem [resolvable:$true] %s1015_s5 }
  0x40   : > { %454 = vmatprep.subr.bf16.mxu0 %v1221_v5  ;;  %v1239_v21 = vld [vmem:[%s1675_s2 + $0x60] sm:$0xff]   ;;  %v1240_v22 = vld [vmem:[%s1675_s2 + $0x68] sm:$0xff]   ;;  %v1241_v23 = vld [vmem:[%s1675_s2 + $0x70] sm:$0xff]   ;;  %s1107_s8 = sshll.u32 %s1692_s26, 3  ;;  %s1001_s13 = scalar_lea.sflag [#allocation4], %s1489_s14 }
  0x41   : > { %v1242_v24 = vld [vmem:[%s1675_s2 + $0x78] sm:$0xff]   ;;  %v1245_v27 = vld [vmem:[%s1676_s3 + $0x4] ss:$8 sps:$4 sm:$0xff]   ;;  %s236_s12 = scalar_lea.vmem %s1673_s0, %s1107_s8  ;;  %s1285_s19 = scalar_lea.vmem %s1632_s5, 256 }
  0x42   : > { %819 = vmatprep.mubr.bf16.mxu1 %v1245_v27  ;;  %p1286_p10 = scmp.ne.s32.totalorder %s1632_s5, %s1285_s19  ;;  %p1685_p11 = scmp.ne.s32.totalorder %s1681_s27, 0 }
  0x43   : > { %455 = vmatpush1.bf16.msra.mxu0 %v1223_v6  ;;  %s1358_s20 = smov [#allocation5]  }
  0x44   : > { %456 = vmatprep.subr.bf16.mxu0 %v1224_v7  ;;  %p1287_p12 = pnand %p1286_p10, %p1685_p11  ;;  %s1289_s22 = sshll.u32 %s1358_s20, 4  ;;  %s1290_s22 = int_to_ptr.vmem [resolvable:$false] %s1289_s22 }
  0x45   : > { %s1291_s23 = scalar_lea.vmem %s1290_s22, 512  ;;  %p1292_p9 = scmp.lt.s32.totalorder %s1632_s5, %s1290_s22 }
  0x46   : > { %p1288_p8 = pneg %p1287_p12  ;;  %p1293_p0 = scmp.lt.s32.totalorder %s1291_s23, %s1285_s19 }
  0x47   : > { %457 = vmatpush1.bf16.msra.mxu0 %v1226_v8 }
  0x48   : > { %p1294_p2 = por %p1293_p0, %p1292_p9 }
  0x4a   : > { %1132 = vmatmul.mubr.msk.bf16.vlgmr.msra.gmra.mrb[0].mxu0 %vm401_vm0, %v1227_v9  ;;  %p1295_p4 = pnand %p1294_p2, %p1288_p8 }
  0x4b   : > { %492 = vmatprep.mubr.bf16.mxu0 %v1357_v0 }
  0x52   : > { %1133 = vmatmul.mubr.msk.bf16.gmra.mrb[4].mxu0 %vm401_vm0, %v1228_v10 }
  0x53   : > { %502 = vmatprep.mubr.bf16.mxu0 %v1357_v0 }
  0x5a   : > { %1134 = vmatmul.mubr.msk.bf16.gmra.mrb[8].mxu0 %vm401_vm0, %v1229_v11 }
  0x5b   : > { %512 = vmatprep.mubr.bf16.mxu0 %v1357_v0 }
  0x62   : > { %1135 = vmatmul.mubr.msk.bf16.gmra.mrb[12].mxu0 %vm401_vm0, %v1230_v12 }
  0x63   : > { %522 = vmatprep.mubr.bf16.mxu0 %v1357_v0 }
  0x6a   : > { %1136 = vmatmul.mubr.msk.bf16.gmra.mrb[16].mxu0 %vm401_vm0, %v1231_v13 }
  0x6b   : > { %532 = vmatprep.mubr.bf16.mxu0 %v1357_v0 }
  0x72   : > { %1137 = vmatmul.mubr.msk.bf16.gmra.mrb[20].mxu0 %vm401_vm0, %v1232_v14 }
  0x73   : > { %542 = vmatprep.mubr.bf16.mxu0 %v1357_v0 }
  0x7a   : > { %1138 = vmatmul.mubr.msk.bf16.gmra.mrb[24].mxu0 %vm401_vm0, %v1233_v15 }
  0x7b   : > { %552 = vmatprep.mubr.bf16.mxu0 %v1357_v0 }
  0x82   : > { %1139 = vmatmul.mubr.msk.bf16.gmra.mrb[28].mxu0 %vm401_vm0, %v1234_v16 }
  0x83   : > { %562 = vmatprep.mubr.bf16.mxu0 %v1357_v0 }
  0x8a   : > { %1140 = vmatmul.mubr.msk.bf16.gmra.mrb[32].mxu0 %vm401_vm0, %v1235_v17 }
  0x8b   : > { %572 = vmatprep.mubr.bf16.mxu0 %v1357_v0 }
  0x92   : > { %1141 = vmatmul.mubr.msk.bf16.gmra.mrb[36].mxu0 %vm401_vm0, %v1236_v18 }
  0x93   : > { %582 = vmatprep.mubr.bf16.mxu0 %v1357_v0 }
  0x9a   : > { %1142 = vmatmul.mubr.msk.bf16.gmra.mrb[40].mxu0 %vm401_vm0, %v1237_v19 }
  0x9b   : > { %592 = vmatprep.mubr.bf16.mxu0 %v1357_v0 }
  0xa2   : > { %1143 = vmatmul.mubr.msk.bf16.gmra.mrb[44].mxu0 %vm401_vm0, %v1238_v20 }
  0xa3   : > { %602 = vmatprep.mubr.bf16.mxu0 %v1357_v0 }
  0xaa   : > { %1144 = vmatmul.mubr.msk.bf16.gmra.mrb[48].mxu0 %vm401_vm0, %v1239_v21 }
  0xab   : > { %612 = vmatprep.mubr.bf16.mxu0 %v1357_v0 }
  0xb2   : > { %1145 = vmatmul.mubr.msk.bf16.gmra.mrb[52].mxu0 %vm401_vm0, %v1240_v22 }
  0xb3   : > { %622 = vmatprep.mubr.bf16.mxu0 %v1357_v0 }
  0xba   : > { %1146 = vmatmul.mubr.msk.bf16.gmra.mrb[56].mxu0 %vm401_vm0, %v1241_v23 }
  0xbb   : > { %632 = vmatprep.mubr.bf16.mxu0 %v1357_v0 }
  0xc2   : > { %1147 = vmatmul.mubr.msk.bf16.gmra.mrb[60].mxu0 %vm401_vm0, %v1242_v24 }
 0x11d   : > { %v484_v25 = vpop.f32.mrb[0].mxu0 }
 0x11e   : > { %v486_v26 = vpop.f32.mrb[1].mxu0  ;;  %v643_v29 = vmax.f32 %v484_v25, 0.0 }
 0x11f   : > { %v488_v28 = vpop.f32.mrb[2].mxu0  ;;  %v644_v32 = vmax.f32 %v486_v26, 0.0 }
 0x120   : > { %v645_v30 = vmax.f32 %v488_v28, 0.0  ;;  %v490_v31 = vpop.f32.mrb[3].mxu0 }
 0x121   : > { %v646_v33 = vmax.f32 %v490_v31, 0.0 }
 0x122   : > { %v707_v34 = vpack.c.bf16 %v645_v30, %v643_v29 }
 0x123   : > { %v708_v35 = vpack.c.bf16 %v646_v33, %v644_v32 }
 0x125   : > { %v494_v36 = vpop.f32.mrb[4].mxu0  ;;  %787 = vmatprep.subr.bf16.mxu1 %v708_v35 }
 0x126   : > { %v496_v37 = vpop.f32.mrb[5].mxu0  ;;  %788 = vmatpush1.bf16.msra.mxu1 %v707_v34  ;;  %v647_v39 = vmax.f32 %v494_v36, 0.0 }
 0x127   : > { %v498_v38 = vpop.f32.mrb[6].mxu0  ;;  %v648_v42 = vmax.f32 %v496_v37, 0.0 }
 0x128   : > { %v649_v40 = vmax.f32 %v498_v38, 0.0  ;;  %v500_v41 = vpop.f32.mrb[7].mxu0 }
 0x129   : > { %v650_v43 = vmax.f32 %v500_v41, 0.0 }
 0x12a   : > { %v709_v44 = vpack.c.bf16 %v649_v40, %v647_v39 }
 0x12b   : > { %v710_v45 = vpack.c.bf16 %v650_v43, %v648_v42 }
 0x12d   : > { %v504_v46 = vpop.f32.mrb[8].mxu0  ;;  %789 = vmatprep.subr.bf16.mxu1 %v710_v45 }
 0x12e   : > { %v506_v47 = vpop.f32.mrb[9].mxu0  ;;  %790 = vmatpush1.bf16.msra.mxu1 %v709_v44  ;;  %v651_v49 = vmax.f32 %v504_v46, 0.0 }
 0x12f   : > { %v508_v48 = vpop.f32.mrb[10].mxu0  ;;  %v652_v52 = vmax.f32 %v506_v47, 0.0 }
 0x130   : > { %v653_v50 = vmax.f32 %v508_v48, 0.0  ;;  %v510_v51 = vpop.f32.mrb[11].mxu0 }
 0x131   : > { %v654_v53 = vmax.f32 %v510_v51, 0.0 }
 0x132   : > { %v711_v54 = vpack.c.bf16 %v653_v50, %v651_v49 }
 0x133   : > { %v712_v55 = vpack.c.bf16 %v654_v53, %v652_v52 }
 0x135   : > { %v514_v56 = vpop.f32.mrb[12].mxu0  ;;  %791 = vmatprep.subr.bf16.mxu1 %v712_v55 }
 0x136   : > { %v516_v57 = vpop.f32.mrb[13].mxu0  ;;  %792 = vmatpush1.bf16.msra.mxu1 %v711_v54  ;;  %v655_v59 = vmax.f32 %v514_v56, 0.0 }
 0x137   : > { %v518_v58 = vpop.f32.mrb[14].mxu0  ;;  %v656_v62 = vmax.f32 %v516_v57, 0.0 }
 0x138   : > { %v657_v60 = vmax.f32 %v518_v58, 0.0  ;;  %v520_v61 = vpop.f32.mrb[15].mxu0 }
 0x139   : > { %v658_v63 = vmax.f32 %v520_v61, 0.0 }
 0x13a   : > { %v713_v0 = vpack.c.bf16 %v657_v60, %v655_v59 }
 0x13b   : > { %v714_v1 = vpack.c.bf16 %v658_v63, %v656_v62 }
 0x13d   : > { %v524_v2 = vpop.f32.mrb[16].mxu0  ;;  %793 = vmatprep.subr.bf16.mxu1 %v714_v1 }
 0x13e   : > { %v526_v3 = vpop.f32.mrb[17].mxu0  ;;  %794 = vmatpush1.bf16.msra.mxu1 %v713_v0  ;;  %v659_v5 = vmax.f32 %v524_v2, 0.0 }
 0x13f   : > { %v528_v4 = vpop.f32.mrb[18].mxu0  ;;  %v660_v8 = vmax.f32 %v526_v3, 0.0 }
 0x140   : > { %v661_v6 = vmax.f32 %v528_v4, 0.0  ;;  %v530_v7 = vpop.f32.mrb[19].mxu0 }
 0x141   : > { %v662_v9 = vmax.f32 %v530_v7, 0.0 }
 0x142   : > { %v715_v10 = vpack.c.bf16 %v661_v6, %v659_v5 }
 0x143   : > { %v716_v11 = vpack.c.bf16 %v662_v9, %v660_v8 }
 0x145   : > { %v534_v12 = vpop.f32.mrb[20].mxu0  ;;  %795 = vmatprep.subr.bf16.mxu1 %v716_v11 }
 0x146   : > { %v536_v13 = vpop.f32.mrb[21].mxu0  ;;  %796 = vmatpush1.bf16.msra.mxu1 %v715_v10  ;;  %v663_v15 = vmax.f32 %v534_v12, 0.0 }
 0x147   : > { %v538_v14 = vpop.f32.mrb[22].mxu0  ;;  %v664_v18 = vmax.f32 %v536_v13, 0.0 }
 0x148   : > { %v665_v16 = vmax.f32 %v538_v14, 0.0  ;;  %v540_v17 = vpop.f32.mrb[23].mxu0 }
 0x149   : > { %v666_v19 = vmax.f32 %v540_v17, 0.0 }
 0x14a   : > { %v717_v20 = vpack.c.bf16 %v665_v16, %v663_v15 }
 0x14b   : > { %v718_v21 = vpack.c.bf16 %v666_v19, %v664_v18 }
 0x14d   : > { %v544_v22 = vpop.f32.mrb[24].mxu0  ;;  %797 = vmatprep.subr.bf16.mxu1 %v718_v21 }
 0x14e   : > { %v546_v23 = vpop.f32.mrb[25].mxu0  ;;  %798 = vmatpush1.bf16.msra.mxu1 %v717_v20  ;;  %v667_v25 = vmax.f32 %v544_v22, 0.0 }
 0x14f   : > { %v548_v24 = vpop.f32.mrb[26].mxu0  ;;  %v668_v28 = vmax.f32 %v546_v23, 0.0 }
 0x150   : > { %v669_v26 = vmax.f32 %v548_v24, 0.0  ;;  %v550_v27 = vpop.f32.mrb[27].mxu0 }
 0x151   : > { %v670_v29 = vmax.f32 %v550_v27, 0.0 }
 0x152   : > { %v719_v30 = vpack.c.bf16 %v669_v26, %v667_v25 }
 0x153   : > { %v720_v31 = vpack.c.bf16 %v670_v29, %v668_v28 }
 0x155   : > { %v554_v32 = vpop.f32.mrb[28].mxu0  ;;  %799 = vmatprep.subr.bf16.mxu1 %v720_v31 }
 0x156   : > { %v556_v33 = vpop.f32.mrb[29].mxu0  ;;  %800 = vmatpush1.bf16.msra.mxu1 %v719_v30  ;;  %v671_v35 = vmax.f32 %v554_v32, 0.0 }
 0x157   : > { %v558_v34 = vpop.f32.mrb[30].mxu0  ;;  %v672_v38 = vmax.f32 %v556_v33, 0.0 }
 0x158   : > { %v673_v36 = vmax.f32 %v558_v34, 0.0  ;;  %v560_v37 = vpop.f32.mrb[31].mxu0 }
 0x159   : > { %v674_v39 = vmax.f32 %v560_v37, 0.0 }
 0x15a   : > { %v721_v40 = vpack.c.bf16 %v673_v36, %v671_v35 }
 0x15b   : > { %v722_v41 = vpack.c.bf16 %v674_v39, %v672_v38 }
 0x15d   : > { %v564_v42 = vpop.f32.mrb[32].mxu0  ;;  %801 = vmatprep.subr.bf16.mxu1 %v722_v41 }
 0x15e   : > { %v566_v43 = vpop.f32.mrb[33].mxu0  ;;  %802 = vmatpush1.bf16.msra.mxu1 %v721_v40  ;;  %v675_v45 = vmax.f32 %v564_v42, 0.0 }
 0x15f   : > { %v568_v44 = vpop.f32.mrb[34].mxu0  ;;  %v676_v48 = vmax.f32 %v566_v43, 0.0 }
 0x160   : > { %v677_v46 = vmax.f32 %v568_v44, 0.0  ;;  %v570_v47 = vpop.f32.mrb[35].mxu0 }
 0x161   : > { %v678_v49 = vmax.f32 %v570_v47, 0.0 }
 0x162   : > { %v723_v50 = vpack.c.bf16 %v677_v46, %v675_v45 }
 0x163   : > { %v724_v51 = vpack.c.bf16 %v678_v49, %v676_v48 }
 0x165   : > { %v574_v52 = vpop.f32.mrb[36].mxu0  ;;  %803 = vmatprep.subr.bf16.mxu1 %v724_v51 }
 0x166   : > { %v576_v53 = vpop.f32.mrb[37].mxu0  ;;  %804 = vmatpush1.bf16.msra.mxu1 %v723_v50  ;;  %v679_v55 = vmax.f32 %v574_v52, 0.0 }
 0x167   : > { %v578_v54 = vpop.f32.mrb[38].mxu0  ;;  %v680_v58 = vmax.f32 %v576_v53, 0.0 }
 0x168   : > { %v681_v56 = vmax.f32 %v578_v54, 0.0  ;;  %v580_v57 = vpop.f32.mrb[39].mxu0 }
 0x169   : > { %v682_v59 = vmax.f32 %v580_v57, 0.0 }
 0x16a   : > { %v725_v60 = vpack.c.bf16 %v681_v56, %v679_v55 }
 0x16b   : > { %v726_v61 = vpack.c.bf16 %v682_v59, %v680_v58  ;;  %v1243_v58 = vld [vmem:[%s1676_s3] ss:$8 sps:$4 sm:$0xff]   ;;  %v1246_v59 = vld [vmem:[%s1676_s3 + $0x14] ss:$8 sps:$4 sm:$0xff]  }
 0x16d   : > { %v584_v62 = vpop.f32.mrb[40].mxu0  ;;  %805 = vmatprep.subr.bf16.mxu1 %v726_v61  ;;  %v1249_v61 = vld [vmem:[%s1676_s3 + $0x24] ss:$8 sps:$4 sm:$0xff]  }
 0x16e   : > { %v586_v63 = vpop.f32.mrb[41].mxu0  ;;  %806 = vmatpush1.bf16.msra.mxu1 %v725_v60  ;;  %v683_v1 = vmax.f32 %v584_v62, 0.0  ;;  %v1248_v60 = vld [vmem:[%s1676_s3 + $0x10] ss:$8 sps:$4 sm:$0xff]   ;;  %v1251_v62 = vld [vmem:[%s1676_s3 + $0x20] ss:$8 sps:$4 sm:$0xff]  }
 0x16f   : > { %v588_v0 = vpop.f32.mrb[42].mxu0  ;;  %v684_v4 = vmax.f32 %v586_v63, 0.0  ;;  %v1252_v63 = vld [vmem:[%s1676_s3 + $0x34] ss:$8 sps:$4 sm:$0xff]  }
 0x170   : > { %v685_v2 = vmax.f32 %v588_v0, 0.0  ;;  %v590_v3 = vpop.f32.mrb[43].mxu0  ;;  %v1254_v0 = vld [vmem:[%s1676_s3 + $0x30] ss:$8 sps:$4 sm:$0xff]  }
 0x171   : > { %v686_v5 = vmax.f32 %v590_v3, 0.0 }
 0x172   : > { %v727_v6 = vpack.c.bf16 %v685_v2, %v683_v1  ;;  %v860_v1 = vld [vmem:[%s236_s12] ss:$8 sm:$0x3]  ;;  %v1156_v2 = vld [vmem:[%s236_s12 + $0x1] ss:$8 sm:$0x3] }
 0x173   : > { %v728_v7 = vpack.c.bf16 %v686_v5, %v684_v4  ;;  %v865_v3 = vsub.f32 1.0, %v860_v1  ;;  %v866_v4 = vsub.f32 1.0, %v1156_v2  ;;  %v881_v5 = vlaneseq }
 0x175   : > { %v594_v8 = vpop.f32.mrb[44].mxu0  ;;  %807 = vmatprep.subr.bf16.mxu1 %v728_v7 }
 0x176   : > { %v596_v9 = vpop.f32.mrb[45].mxu0  ;;  %808 = vmatpush1.bf16.msra.mxu1 %v727_v6  ;;  %v687_v11 = vmax.f32 %v594_v8, 0.0  ;;  %v1157_v6 = vld [vmem:[%s236_s12 + $0x2] ss:$8 sm:$0x3]  ;;  %v868_v8 = vmul.f32 %v866_v4, %v865_v3 }
 0x177   : > { %v598_v10 = vpop.f32.mrb[46].mxu0  ;;  %v688_v14 = vmax.f32 %v596_v9, 0.0  ;;  %v867_v7 = vsub.f32 1.0, %v1157_v6  ;;  %v882_v9 = vshrl.u32 %v881_v5, 7 }
 0x178   : > { %v689_v12 = vmax.f32 %v598_v10, 0.0  ;;  %v600_v13 = vpop.f32.mrb[47].mxu0  ;;  %v869_v10 = vmul.f32 %v866_v4, %v860_v1 }
 0x179   : > { %v690_v15 = vmax.f32 %v600_v13, 0.0 }
 0x17a   : > { %v729_v16 = vpack.c.bf16 %v689_v12, %v687_v11  ;;  %v872_v11 = vmul.f32 %v868_v8, %v867_v7  ;;  %v1605_v12 = vsub.s32 0, %v882_v9  ;;  %v873_v13 = vmul.f32 %v869_v10, %v867_v7 }
 0x17b   : > { %v730_v17 = vpack.c.bf16 %v690_v15, %v688_v14  ;;  %v1607_v14 = vsub.s32 1, %v882_v9  ;;  %v870_v15 = vmul.f32 %v1156_v2, %v865_v3 }
 0x17d   : > { %v604_v18 = vpop.f32.mrb[48].mxu0  ;;  %809 = vmatprep.subr.bf16.mxu1 %v730_v17  ;;  %v897_v17 = vrot.slane %v873_v13, %v1605_v12 }
 0x17e   : > { %v606_v19 = vpop.f32.mrb[49].mxu0  ;;  %810 = vmatpush1.bf16.msra.mxu1 %v729_v16  ;;  %v691_v21 = vmax.f32 %v604_v18, 0.0  ;;  %v884_v16 = vrot.slane %v872_v11, %v1605_v12  ;;  %v871_v18 = vmul.f32 %v1156_v2, %v860_v1 }
 0x17f   : > { %v608_v20 = vpop.f32.mrb[50].mxu0  ;;  %v692_v24 = vmax.f32 %v606_v19, 0.0 }
 0x180   : > { %v693_v22 = vmax.f32 %v608_v20, 0.0  ;;  %v610_v23 = vpop.f32.mrb[51].mxu0  ;;  %v888_v20 = vrot.slane %v872_v11, %v1607_v14 }
 0x181   : > { %v694_v25 = vmax.f32 %v610_v23, 0.0  ;;  %v874_v23 = vmul.f32 %v870_v15, %v867_v7 }
 0x182   : > { %v731_v26 = vpack.c.bf16 %v693_v22, %v691_v21  ;;  %v901_v21 = vrot.slane %v873_v13, %v1607_v14 }
 0x183   : > { %v732_v27 = vpack.c.bf16 %v694_v25, %v692_v24 }
 0x185   : > { %v614_v28 = vpop.f32.mrb[52].mxu0  ;;  %811 = vmatprep.subr.bf16.mxu1 %v732_v27 }
 0x186   : > { %v616_v29 = vpop.f32.mrb[53].mxu0  ;;  %812 = vmatpush1.bf16.msra.mxu1 %v731_v26  ;;  %v695_v31 = vmax.f32 %v614_v28, 0.0  ;;  %v875_v28 = vmul.f32 %v871_v18, %v867_v7 }
 0x187   : > { %v618_v30 = vpop.f32.mrb[54].mxu0  ;;  %v696_v34 = vmax.f32 %v616_v29, 0.0 }
 0x188   : > { %v697_v32 = vmax.f32 %v618_v30, 0.0  ;;  %v620_v33 = vpop.f32.mrb[55].mxu0 }
 0x189   : > { %v698_v35 = vmax.f32 %v620_v33, 0.0 }
 0x18a   : > { %v733_v36 = vpack.c.bf16 %v697_v32, %v695_v31  ;;  %v912_v32 = vrot.slane %v874_v23, %v1605_v12 }
 0x18b   : > { %v734_v37 = vpack.c.bf16 %v698_v35, %v696_v34  ;;  %v916_v34 = vrot.slane %v874_v23, %v1607_v14  ;;  %v927_v35 = vrot.slane %v875_v28, %v1605_v12 }
 0x18d   : > { %v624_v38 = vpop.f32.mrb[56].mxu0  ;;  %813 = vmatprep.subr.bf16.mxu1 %v734_v37  ;;  %v931_v37 = vrot.slane %v875_v28, %v1607_v14 }
 0x18e   : > { %v626_v39 = vpop.f32.mrb[57].mxu0  ;;  %814 = vmatpush1.bf16.msra.mxu1 %v733_v36  ;;  %v699_v41 = vmax.f32 %v624_v38, 0.0 }
 0x18f   : > { %v628_v40 = vpop.f32.mrb[58].mxu0  ;;  %v700_v44 = vmax.f32 %v626_v39, 0.0 }
 0x190   : > { %v701_v42 = vmax.f32 %v628_v40, 0.0  ;;  %v630_v43 = vpop.f32.mrb[59].mxu0  ;;  %v876_v40 = vmul.f32 %v1157_v6, %v868_v8 }
 0x191   : > { %v702_v45 = vmax.f32 %v630_v43, 0.0 }
 0x192   : > { %v735_v46 = vpack.c.bf16 %v701_v42, %v699_v41 }
 0x193   : > { %v736_v47 = vpack.c.bf16 %v702_v45, %v700_v44 }
 0x195   : > { %v634_v48 = vpop.f32.mrb[60].mxu0  ;;  %815 = vmatprep.subr.bf16.mxu1 %v736_v47 }
 0x196   : > { %v636_v49 = vpop.f32.mrb[61].mxu0  ;;  %816 = vmatpush1.bf16.msra.mxu1 %v735_v46  ;;  %v703_v51 = vmax.f32 %v634_v48, 0.0  ;;  %v877_v46 = vmul.f32 %v1157_v6, %v869_v10 }
 0x197   : > { %v638_v50 = vpop.f32.mrb[62].mxu0  ;;  %v704_v54 = vmax.f32 %v636_v49, 0.0 }
 0x198   : > { %v705_v52 = vmax.f32 %v638_v50, 0.0  ;;  %v640_v53 = vpop.f32.mrb[63].mxu0  ;;  %v942_v50 = vrot.slane %v876_v40, %v1605_v12 }
 0x199   : > { %v706_v55 = vmax.f32 %v640_v53, 0.0  ;;  %v957_v53 = vrot.slane %v877_v46, %v1605_v12 }
 0x19a   : > { %v737_v56 = vpack.c.bf16 %v705_v52, %v703_v51  ;;  %v946_v52 = vrot.slane %v876_v40, %v1607_v14 }
 0x19b   : > { %v738_v57 = vpack.c.bf16 %v706_v55, %v704_v54  ;;  %v961_v55 = vrot.slane %v877_v46, %v1607_v14 }
 0x19d   : > { %817 = vmatprep.subr.bf16.mxu1 %v738_v57 }
 0x19e   : > { %818 = vmatpush1.bf16.msra.mxu1 %v737_v56 }
 0x1a1   : > { %820 = vmatmul.mubr.bf16.vlgmr.msra.gmra.mrb[0].mxu1 %v1243_v58  ;;  %v878_v58 = vmul.f32 %v1157_v6, %v870_v15 }
 0x1a2   : > { %829 = vmatprep.mubr.bf16.mxu1 %v1246_v59 }
 0x1a3   : > { %v972_v4 = vrot.slane %v878_v58, %v1605_v12  ;;  %v976_v7 = vrot.slane %v878_v58, %v1607_v14 }
 0x1a9   : > { %830 = vmatmul.mubr.bf16.gmra.mrb[4].mxu1 %v1248_v60 }
 0x1aa   : > { %839 = vmatprep.mubr.bf16.mxu1 %v1249_v61 }
 0x1b1   : > { %840 = vmatmul.mubr.bf16.gmra.mrb[8].mxu1 %v1251_v62 }
 0x1b2   : > { %849 = vmatprep.mubr.bf16.mxu1 %v1252_v63 }
 0x1b9   : > { %850 = vmatmul.mubr.bf16.gmra.mrb[12].mxu1 %v1254_v0  ;;  %v879_v0 = vmul.f32 %v1157_v6, %v871_v18 }
 0x1bb   : > { %v987_v8 = vrot.slane %v879_v0, %v1605_v12  ;;  %v991_v10 = vrot.slane %v879_v0, %v1607_v14 }
 0x274   : > { %v821_v19 = vpop.f32.mrb[0].mxu1 }
 0x275   : > { %v823_v22 = vpop.f32.mrb[1].mxu1  ;;  %v891_v25 = vmul.f32 %v884_v16, %v821_v19 }
 0x276   : > { %v825_v24 = vpop.f32.mrb[2].mxu1  ;;  %v892_v29 = vmul.f32 %v888_v20, %v823_v22 }
 0x277   : > { %v904_v26 = vmul.f32 %v897_v17, %v825_v24  ;;  %v827_v27 = vpop.f32.mrb[3].mxu1 }
 0x278   : > { %v905_v30 = vmul.f32 %v901_v21, %v827_v27 }
 0x279   : > { %v906_v31 = vadd.f32 %v904_v26, %v891_v25 }
 0x27a   : > { %v907_v33 = vadd.f32 %v905_v30, %v892_v29 }
 0x27c   : > { %v831_v36 = vpop.f32.mrb[4].mxu1 }
 0x27d   : > { %v919_v38 = vmul.f32 %v912_v32, %v831_v36  ;;  %v833_v39 = vpop.f32.mrb[5].mxu1 }
 0x27e   : > { %v920_v41 = vmul.f32 %v916_v34, %v833_v39  ;;  %v835_v42 = vpop.f32.mrb[6].mxu1 }
 0x27f   : > { %v921_v43 = vadd.f32 %v919_v38, %v906_v31  ;;  %v934_v44 = vmul.f32 %v927_v35, %v835_v42  ;;  %v837_v45 = vpop.f32.mrb[7].mxu1 }
 0x280   : > { %v922_v47 = vadd.f32 %v920_v41, %v907_v33  ;;  %v935_v48 = vmul.f32 %v931_v37, %v837_v45 }
 0x281   : > { %v936_v49 = vadd.f32 %v934_v44, %v921_v43 }
 0x282   : > { %v937_v51 = vadd.f32 %v935_v48, %v922_v47 }
 0x284   : > { %v841_v54 = vpop.f32.mrb[8].mxu1 }
 0x285   : > { %v949_v56 = vmul.f32 %v942_v50, %v841_v54  ;;  %v843_v57 = vpop.f32.mrb[9].mxu1 }
 0x286   : > { %v950_v59 = vmul.f32 %v946_v52, %v843_v57  ;;  %v845_v60 = vpop.f32.mrb[10].mxu1 }
 0x287   : > { %v951_v61 = vadd.f32 %v949_v56, %v936_v49  ;;  %v964_v62 = vmul.f32 %v957_v53, %v845_v60  ;;  %v847_v63 = vpop.f32.mrb[11].mxu1 }
 0x288   : > { %v952_v1 = vadd.f32 %v950_v59, %v937_v51  ;;  %v965_v2 = vmul.f32 %v961_v55, %v847_v63 }
 0x289   : > { %v966_v3 = vadd.f32 %v964_v62, %v951_v61 }
 0x28a   : > { %v967_v5 = vadd.f32 %v965_v2, %v952_v1 }
 0x28c   : > { %v851_v9 = vpop.f32.mrb[12].mxu1 }
 0x28d   : > { %v979_v11 = vmul.f32 %v972_v4, %v851_v9  ;;  %v853_v13 = vpop.f32.mrb[13].mxu1 }
 0x28e   : > { %v980_v15 = vmul.f32 %v976_v7, %v853_v13  ;;  %v855_v6 = vpop.f32.mrb[14].mxu1 }
 0x28f   : > { %v981_v16 = vadd.f32 %v979_v11, %v966_v3  ;;  %v994_v17 = vmul.f32 %v987_v8, %v855_v6  ;;  %v857_v18 = vpop.f32.mrb[15].mxu1 }
 0x290   : > { %v982_v19 = vadd.f32 %v980_v15, %v967_v5  ;;  %v995_v20 = vmul.f32 %v991_v10, %v857_v18 }
 0x291   : > { %v996_v21 = vadd.f32 %v994_v17, %v981_v16 }
 0x292   : > { %v997_v22 = vadd.f32 %v995_v20, %v982_v19 }
 0x293   : > { %998 = vst [vmem:[%s231_s30] sm:$0xff] %v996_v21 }
 0x294   : > { %999 = vst [vmem:[%s231_s30 + $0x8] sm:$0xff] %v997_v22 }
 0x295   : > { %1298 = shalt.err (!%p1295_p4)
}
 0x296   : > { %s1299_s14 = scalar_lea.hbm %s1630_s9, 256  ;;  %s1303_s10 = scalar_lea.hbm %s1677_s4, 1024 }
 0x297   : > { %p1300_p5 = scmp.ne.s32.totalorder %s1630_s9, %s1299_s14  ;;  %p1304_p1 = scmp.lt.u32.totalorder %s1630_s9, %s1677_s4 }
 0x298   : > { %p1305_p3 = scmp.lt.u32.totalorder %s1303_s10, %s1299_s14  ;;  %p1307_p10 = scmp.lt.u32.totalorder %s1299_s14, %s1630_s9 }
 0x299   : > { %p1301_p7 = pnand %p1300_p5, %p1685_p11 }
 0x29a   : > { %p1306_p6 = por %p1305_p3, %p1304_p1 }
 0x29b   : > { %p1302_p13 = pneg %p1301_p7 }
 0x29c   : > { %p1308_p12 = por %p1307_p10, %p1306_p6 }
 0x29e   : > { %p1309_p8 = pnand %p1308_p12, %p1302_p13 }
 0x2a0   : > { %1312 = shalt.err (!%p1309_p8)
}
 0x2a1   : > { %1167 = dma.vmem_to_hbm [thread:$0]  (%p1685_p11), %s1632_s5, 256, %s1630_s9, %s1001_s13  }
 0x2a2 PF: > { %p1178_p9 = scmp.ge.s32.totalorder %s1351_s18, 2  ;;  %s1027_s25 = sand.u32 1, %s1339_s15  }
 0x2a3   : > { %p1686_p0 = scmp.ne.s32.totalorder %s1682_s28, 0  ;;  %s1028_s29 = scalar_lea.sflag [#allocation4], %s1027_s25 }
 0x2a5   : > { %p1174_p2 = pnand %p1178_p9, %p1686_p0 }
 0x2a7   : > { %1334 = dma.done.wait (!%p1174_p2), %s1028_s29, 256  }
 0x2a8   : > { %1336 = vsyncadd (!%p1174_p2), %s1028_s29, 4294967040  ;;  %p17_p4 = scmp.ge.s32.totalorder %s1409_s21, 6   ;;  %s1687_s15 = smov %s1343_s16 }
 0x2a9   : > { %s1688_s16 = smov %s1347_s17  ;;  %s1689_s17 = smov %s1421_s24 }
 0x2aa   : > { %s1690_s18 = smov %s1409_s21  ;;  %19 = sbr.rel (!%p17_p4) target bundleno = 5 (0x5), region = 86 }
 0x2b1   :  { %1033 = vsyncpa [#allocation3], 1 }
 0x2b2   :  { %1035 = vsyncpa [#allocation3 + $0x1], 1 }
 0x2b3   :  { %1036 = vsyncpa [#allocation4], 1 }
 0x2b4   :  { %1038 = vsyncpa [#allocation4 + $0x1], 1 }

</bundles_post_ra>
